<compile_context>
chip_gen: v5e
topology: v5e:2x2
jax: 0.10.0
libtpu: 0.0.40
codegen_flags: <defaults>
</compile_context>

<pallas_src>
import functools

import jax
import jax.numpy as jnp
from jax import lax
from jax.experimental import pallas as pl
from jax.experimental.pallas import tpu as pltpu


def _round_up(x: int, m: int) -> int:
    return ((x + m - 1) // m) * m


def _make_rnn_kernel(T: int, B: int):
    """T = number of timesteps, B = padded batch (sublane-aligned)."""
    unroll = T if T <= 8 else 4

    def kernel(x_ref, h0_ref, wx_ref, wh_ref, bc_ref, wlm_ref, blm_ref,
               out_ref, hid_scr):
        # x_ref   : (T*B, D)   time-major padded embeddings   (resident)
        # h0_ref  : (B, H)     initial hidden state           (resident)
        # wx_ref  : (D, H)     cell weight acting on x        (resident)
        # wh_ref  : (H, H)     cell weight acting on h_prev   (resident)
        # bc_ref  : (1, H)     cell bias                      (resident)
        # wlm_ref : (H, TV)    lm_head weight, V-tile j
        # blm_ref : (1, TV)    lm_head bias,   V-tile j
        # out_ref : (T*B, TV)  lane-dense logits slab, V-tile j
        # hid_scr : (T*B, H)   f32 hidden-state slab (VMEM scratch, persists
        #                      across grid steps)

        # --- serial recurrence: runs once, on the first V-tile ------------
        @pl.when(pl.program_id(0) == 0)
        def _recurrence():
            # Batched input projection for all timesteps, written straight
            # into the hidden-state slab (keeps it out of vregs; each slice
            # is overwritten below with h_t).
            hid_scr[...] = (jnp.dot(x_ref[...], wx_ref[...],
                                    preferred_element_type=jnp.float32)
                            + bc_ref[...])

            wh = wh_ref[...]                       # hoisted constant weight
            h0 = h0_ref[...].astype(jnp.float32)   # (B, H)

            def step(t, h):
                row = pl.multiple_of(t * B, 8)     # sublane-aligned slice
                pre = hid_scr[pl.ds(row, B), :] + jnp.dot(
                    h, wh, preferred_element_type=jnp.float32)
                h_new = jnp.tanh(pre)
                hid_scr[pl.ds(row, B), :] = h_new
                return h_new

            lax.fori_loop(0, T, step, h0, unroll=unroll)

        # --- lm_head for this V-tile ---------------------------------------
        # Across grid steps the wlm/blm DMA-in and the (TB, TV) writeback are
        # pipelined against the MXU matmul.
        out_ref[...] = (jnp.dot(hid_scr[...], wlm_ref[...],
                                preferred_element_type=jnp.float32)
                        + blm_ref[...]).astype(out_ref.dtype)

    return kernel


@functools.partial(jax.jit, static_argnames=("T", "B_pad", "v_tile"))
def _rnn_forward_pallas(x_flat, h0, wx, wh, bc, wlm, blm, *, T, B_pad, v_tile):
    """x_flat: (T*B_pad, D_pad). Returns logits (T*B_pad, V_pad)."""
    TB, D = x_flat.shape
    H = wh.shape[0]
    V = wlm.shape[1]
    B = B_pad
    num_v_blocks = V // v_tile

    # Advisory cost estimate so XLA schedules surrounding glue realistically.
    flops = 2 * TB * D * H + 2 * T * B * H * H + 2 * TB * H * V
    transcendentals = T * B * H
    bytes_accessed = 4 * (TB * D + B * H + D * H + H * H + H
                          + H * V + V + TB * V)
    cost = pl.CostEstimate(flops=flops,
                           transcendentals=transcendentals,
                           bytes_accessed=bytes_accessed)

    # Explicit VMEM budget: resident inputs + double-buffered V-tiled
    # operands/output + hidden-state scratch (f32). Keeps pipeline depth 2
    # within v7x's smaller VMEM for larger vocab sizes.
    vmem_needed = 4 * (TB * D + B * H + D * H + H * H + H
                       + 2 * (H * v_tile + v_tile + TB * v_tile)
                       + TB * H)
    vmem_limit = int(min(64 * 1024 * 1024,
                         max(vmem_needed + (4 << 20), 16 * 1024 * 1024)))

    grid_spec = pltpu.PrefetchScalarGridSpec(
        num_scalar_prefetch=0,
        grid=(num_v_blocks,),
        in_specs=[
            pl.BlockSpec((TB, D), lambda j: (0, 0)),        # x_flat (resident)
            pl.BlockSpec((B, H), lambda j: (0, 0)),         # h0
            pl.BlockSpec((D, H), lambda j: (0, 0)),         # wx
            pl.BlockSpec((H, H), lambda j: (0, 0)),         # wh
            pl.BlockSpec((1, H), lambda j: (0, 0)),         # b_cell
            pl.BlockSpec((H, v_tile), lambda j: (0, j)),    # w_lm tile
            pl.BlockSpec((1, v_tile), lambda j: (0, j)),    # b_lm tile
        ],
        out_specs=pl.BlockSpec((TB, v_tile), lambda j: (0, j)),
        scratch_shapes=[pltpu.VMEM((TB, H), jnp.float32)],
    )

    return pl.pallas_call(
        _make_rnn_kernel(T, B_pad),
        out_shape=jax.ShapeDtypeStruct((TB, V), jnp.float32),
        grid_spec=grid_spec,
        compiler_params=pltpu.CompilerParams(
            # V-tiles must run in order: tile 0 fills hid_scr for later tiles.
            # TODO(synk): on v7x (2 TCs) a core-parallel split of the lm_head
            # tiles would need hid_scr replicated/shared; kept serial here.
            dimension_semantics=("arbitrary",),
            vmem_limit_bytes=vmem_limit,
        ),
        cost_estimate=cost,
    )(x_flat, h0, wx, wh, bc, wlm, blm)


def prepare_rnn_params(params):
    """One-time weight padding / transposition (hoisted off the fwd path)."""
    emb = jnp.asarray(params["emb"], jnp.float32)
    init_state = jnp.asarray(params["init_state"], jnp.float32)
    w_cell = jnp.asarray(params["w_cell"], jnp.float32)
    b_cell = jnp.asarray(params["b_cell"], jnp.float32)
    w_lm = jnp.asarray(params["w_lm"], jnp.float32)
    b_lm = jnp.asarray(params["b_lm"], jnp.float32)

    D = emb.shape[1]
    H = init_state.shape[1]
    V = w_lm.shape[0]
    D_pad = _round_up(D, 128)
    H_pad = _round_up(H, 128)
    V_pad = _round_up(V, 128)

    # torch Linear weights are (out, in); transpose once to (in, out) and pad.
    # Padded H/V columns are zero so they stay exactly zero through the
    # recurrence and are sliced off after the kernel.
    wx = jnp.zeros((D_pad, H_pad), jnp.float32).at[:D, :H].set(w_cell[:, :D].T)
    wh = jnp.zeros((H_pad, H_pad), jnp.float32).at[:H, :H].set(w_cell[:, D:].T)
    bc = jnp.zeros((1, H_pad), jnp.float32).at[:, :H].set(b_cell.reshape(1, H))
    wlm = jnp.zeros((H_pad, V_pad), jnp.float32).at[:H, :V].set(w_lm.T)
    blm = jnp.zeros((1, V_pad), jnp.float32).at[:, :V].set(b_lm.reshape(1, V))

    return {
        "emb": emb,
        "init_state": init_state,
        "wx": jax.device_put(wx),
        "wh": jax.device_put(wh),
        "bc": jax.device_put(bc),
        "wlm": jax.device_put(wlm),
        "blm": jax.device_put(blm),
        "dims": (D, H, V, D_pad, H_pad, V_pad),
    }


def rnn_model_forward(tokens, prepared):
    """Full RNNModel.forward: embedding (glue) + single Pallas invocation."""
    emb = prepared["emb"]
    init_state = prepared["init_state"]
    D, H, V, D_pad, H_pad, V_pad = prepared["dims"]

    B, T = tokens.shape
    B_pad = _round_up(B, 8)

    # Embedding lookup (glue) + time-major layout + padding.
    x_embed = jnp.take(emb, tokens, axis=0)            # (B, T, D)
    x_tbd = jnp.transpose(x_embed, (1, 0, 2))          # (T, B, D)
    x_pad = jnp.pad(x_tbd, ((0, 0), (0, B_pad - B), (0, D_pad - D)))
    x_flat = x_pad.reshape(T * B_pad, D_pad).astype(jnp.float32)

    # Initial hidden state (padded hidden columns zero -> stay zero).
    h0 = jnp.zeros((B_pad, H_pad), jnp.float32)
    h0 = h0.at[:, :H].set(jnp.broadcast_to(init_state, (B_pad, H)))

    # Vocab tile for the lm_head grid axis (lane-dense multiple of 128).
    if V_pad <= 512:
        v_tile = V_pad
    else:
        v_tile = next(c for c in (512, 384, 256, 128) if V_pad % c == 0)

    logits_flat = _rnn_forward_pallas(
        x_flat, h0, prepared["wx"], prepared["wh"], prepared["bc"],
        prepared["wlm"], prepared["blm"],
        T=T, B_pad=B_pad, v_tile=v_tile)                 # (T*B_pad, V_pad)

    logits = logits_flat.reshape(T, B_pad, V_pad)[:, :B, :V]  # un-pad
    return jnp.transpose(logits, (1, 0, 2))                   # (B, T, V)


def rnn_model_reference(tokens, params):
    """Pure-JAX reference mirroring the PyTorch forward exactly."""
    emb, init_state, w_cell, b_cell, w_lm, b_lm = (
        params["emb"], params["init_state"], params["w_cell"],
        params["b_cell"], params["w_lm"], params["b_lm"])
    B, T = tokens.shape
    H = init_state.shape[1]
    x_embed = emb[tokens]                                # (B, T, D)
    h = jnp.broadcast_to(init_state, (B, H))
    hs = []
    for t in range(T):
        x = x_embed[:, t, :]
        h = jnp.tanh(jnp.concatenate([x, h], axis=1) @ w_cell.T + b_cell)
        hs.append(h)
    hidden = jnp.stack(hs, axis=1)                       # (B, T, H)
    return hidden @ w_lm.T + b_lm                        # (B, T, V)


if __name__ == "__main__":
    VOCAB = 27
    D_WORD = 64
    H_HID = 64
    B, T = 2, 8

    key = jax.random.PRNGKey(0)
    k = jax.random.split(key, 8)

    params = {
        "emb": jax.random.normal(k[0], (VOCAB, D_WORD), jnp.float32) * 0.1,
        "init_state": jnp.zeros((1, H_HID), jnp.float32),
        # torch Linear layout: (out_features, in_features)
        "w_cell": jax.random.normal(k[1], (H_HID, D_WORD + H_HID), jnp.float32)
                  * (1.0 / (D_WORD + H_HID)) ** 0.5,
        "b_cell": jax.random.normal(k[2], (H_HID,), jnp.float32) * 0.1,
        "w_lm": jax.random.normal(k[3], (VOCAB, H_HID), jnp.float32)
                * (1.0 / H_HID) ** 0.5,
        "b_lm": jax.random.normal(k[4], (VOCAB,), jnp.float32) * 0.1,
    }

    tokens = jax.random.randint(k[5], (B, T), 0, VOCAB, dtype=jnp.int32)

    prepared = prepare_rnn_params(params)      # weight prep hoisted, done once
    out = rnn_model_forward(tokens, prepared)
    out = jax.block_until_ready(out)

    ref = rnn_model_reference(tokens, params)
    assert out.shape == (B, T, VOCAB), out.shape
    assert jnp.allclose(out, ref, atol=1e-5, rtol=1e-5), (
        float(jnp.max(jnp.abs(out - ref))))

    print("KERNEL_OK")
</pallas_src>

<mosaic_0001>
module attributes {stable_mosaic.version = 11 : i64} {
  func.func @kernel(%arg0: i32, %arg1: memref<64x128xf32, #tpu.memory_space<vmem>>, %arg2: memref<8x128xf32, #tpu.memory_space<vmem>>, %arg3: memref<128x128xf32, #tpu.memory_space<vmem>>, %arg4: memref<128x128xf32, #tpu.memory_space<vmem>>, %arg5: memref<1x128xf32, #tpu.memory_space<vmem>>, %arg6: memref<128x128xf32, #tpu.memory_space<vmem>>, %arg7: memref<1x128xf32, #tpu.memory_space<vmem>>, %arg8: memref<64x128xf32, #tpu.memory_space<vmem>>, %arg9: memref<64x128xf32, #tpu.memory_space<vmem>>) attributes {dimension_semantics = [#tpu.dimension_semantics<arbitrary>], iteration_bounds = array<i64: 1>, scalar_prefetch = 0 : i64, scratch_operands = 1 : i64, tpu.core_type = #tpu.core_type<tc>, window_params = [{pipeline_mode = #tpu.pipeline_mode<synchronous>, transform_indices = @transform_0, window_bounds = array<i64: 64, 128>}, {pipeline_mode = #tpu.pipeline_mode<synchronous>, transform_indices = @transform_1, window_bounds = array<i64: 8, 128>}, {pipeline_mode = #tpu.pipeline_mode<synchronous>, transform_indices = @transform_2, window_bounds = array<i64: 128, 128>}, {pipeline_mode = #tpu.pipeline_mode<synchronous>, transform_indices = @transform_3, window_bounds = array<i64: 128, 128>}, {pipeline_mode = #tpu.pipeline_mode<synchronous>, transform_indices = @transform_4, window_bounds = array<i64: 1, 128>}, {transform_indices = @transform_5, window_bounds = array<i64: 128, 128>}, {transform_indices = @transform_6, window_bounds = array<i64: 1, 128>}, {transform_indices = @transform_7, window_bounds = array<i64: 64, 128>}]} {
    %c0_i32 = arith.constant 0 : i32
    %0 = arith.cmpi eq, %arg0, %c0_i32 : i32
    %1 = arith.extui %0 : i1 to i32
    %c0_i32_0 = arith.constant 0 : i32
    %2 = arith.cmpi ne, %1, %c0_i32_0 : i32
    scf.if %2 {
      %c0_8 = arith.constant 0 : index
      %c0_9 = arith.constant 0 : index
      %10 = vector.load %arg1[%c0_8, %c0_9] : memref<64x128xf32, #tpu.memory_space<vmem>>, vector<64x128xf32>
      %c0_10 = arith.constant 0 : index
      %c0_11 = arith.constant 0 : index
      %11 = vector.load %arg3[%c0_10, %c0_11] : memref<128x128xf32, #tpu.memory_space<vmem>>, vector<128x128xf32>
      %cst_12 = arith.constant dense<0.000000e+00> : vector<64x128xf32>
      %12 = tpu.matmul %10, %11, %cst_12 {dimension_numbers = #tpu.dot_dimension_numbers<[1], [0], [0], [1], [0, 0, 1, 1], [], []>} : vector<64x128xf32>, vector<128x128xf32>, vector<64x128xf32> -> vector<64x128xf32>
      %c0_13 = arith.constant 0 : index
      %c0_14 = arith.constant 0 : index
      %13 = vector.load %arg5[%c0_13, %c0_14] : memref<1x128xf32, #tpu.memory_space<vmem>>, vector<1x128xf32>
      %14 = vector.broadcast %13 : vector<1x128xf32> to vector<64x128xf32>
      %15 = arith.addf %12, %14 : vector<64x128xf32>
      %c0_15 = arith.constant 0 : index
      %c0_16 = arith.constant 0 : index
      %16 = vector.load %arg9[%c0_15, %c0_16] : memref<64x128xf32, #tpu.memory_space<vmem>>, vector<64x128xf32>
      tpu.vector_store %arg9[%c0_15, %c0_16], %15 {strides = array<i32>} : memref<64x128xf32, #tpu.memory_space<vmem>>, vector<64x128xf32>,
      %c0_17 = arith.constant 0 : index
      %c0_18 = arith.constant 0 : index
      %17 = vector.load %arg4[%c0_17, %c0_18] : memref<128x128xf32, #tpu.memory_space<vmem>>, vector<128x128xf32>
      %c0_19 = arith.constant 0 : index
      %c0_20 = arith.constant 0 : index
      %18 = vector.load %arg2[%c0_19, %c0_20] : memref<8x128xf32, #tpu.memory_space<vmem>>, vector<8x128xf32>
      %c0_i32_21 = arith.constant 0 : i32
      %c8_i32 = arith.constant 8 : i32
      %19 = arith.muli %c0_i32_21, %c8_i32 : i32
      %20 = tpu.assume_multiple %19, 8 : i32
      %21 = arith.index_cast %20 : i32 to index
      %c0_22 = arith.constant 0 : index
      %22 = vector.load %arg9[%21, %c0_22] : memref<64x128xf32, #tpu.memory_space<vmem>>, vector<8x128xf32>
      %cst_23 = arith.constant dense<0.000000e+00> : vector<8x128xf32>
      %23 = tpu.matmul %18, %17, %cst_23 {dimension_numbers = #tpu.dot_dimension_numbers<[1], [0], [0], [1], [0, 0, 1, 1], [], []>} : vector<8x128xf32>, vector<128x128xf32>, vector<8x128xf32> -> vector<8x128xf32>
      %24 = arith.addf %22, %23 : vector<8x128xf32>
      %25 = math.tanh %24 : vector<8x128xf32>
      %26 = arith.index_cast %20 : i32 to index
      %c0_24 = arith.constant 0 : index
      %27 = vector.load %arg9[%26, %c0_24] : memref<64x128xf32, #tpu.memory_space<vmem>>, vector<8x128xf32>
      tpu.vector_store %arg9[%26, %c0_24], %25 {strides = array<i32>} : memref<64x128xf32, #tpu.memory_space<vmem>>, vector<8x128xf32>,
      %c1_i32 = arith.constant 1 : i32
      %c8_i32_25 = arith.constant 8 : i32
      %28 = arith.muli %c1_i32, %c8_i32_25 : i32
      %29 = tpu.assume_multiple %28, 8 : i32
      %30 = arith.index_cast %29 : i32 to index
      %c0_26 = arith.constant 0 : index
      %31 = vector.load %arg9[%30, %c0_26] : memref<64x128xf32, #tpu.memory_space<vmem>>, vector<8x128xf32>
      %cst_27 = arith.constant dense<0.000000e+00> : vector<8x128xf32>
      %32 = tpu.matmul %25, %17, %cst_27 {dimension_numbers = #tpu.dot_dimension_numbers<[1], [0], [0], [1], [0, 0, 1, 1], [], []>} : vector<8x128xf32>, vector<128x128xf32>, vector<8x128xf32> -> vector<8x128xf32>
      %33 = arith.addf %31, %32 : vector<8x128xf32>
      %34 = math.tanh %33 : vector<8x128xf32>
      %35 = arith.index_cast %29 : i32 to index
      %c0_28 = arith.constant 0 : index
      %36 = vector.load %arg9[%35, %c0_28] : memref<64x128xf32, #tpu.memory_space<vmem>>, vector<8x128xf32>
      tpu.vector_store %arg9[%35, %c0_28], %34 {strides = array<i32>} : memref<64x128xf32, #tpu.memory_space<vmem>>, vector<8x128xf32>,
      %c2_i32 = arith.constant 2 : i32
      %c8_i32_29 = arith.constant 8 : i32
      %37 = arith.muli %c2_i32, %c8_i32_29 : i32
      %38 = tpu.assume_multiple %37, 8 : i32
      %39 = arith.index_cast %38 : i32 to index
      %c0_30 = arith.constant 0 : index
      %40 = vector.load %arg9[%39, %c0_30] : memref<64x128xf32, #tpu.memory_space<vmem>>, vector<8x128xf32>
      %cst_31 = arith.constant dense<0.000000e+00> : vector<8x128xf32>
      %41 = tpu.matmul %34, %17, %cst_31 {dimension_numbers = #tpu.dot_dimension_numbers<[1], [0], [0], [1], [0, 0, 1, 1], [], []>} : vector<8x128xf32>, vector<128x128xf32>, vector<8x128xf32> -> vector<8x128xf32>
      %42 = arith.addf %40, %41 : vector<8x128xf32>
      %43 = math.tanh %42 : vector<8x128xf32>
      %44 = arith.index_cast %38 : i32 to index
      %c0_32 = arith.constant 0 : index
      %45 = vector.load %arg9[%44, %c0_32] : memref<64x128xf32, #tpu.memory_space<vmem>>, vector<8x128xf32>
      tpu.vector_store %arg9[%44, %c0_32], %43 {strides = array<i32>} : memref<64x128xf32, #tpu.memory_space<vmem>>, vector<8x128xf32>,
      %c3_i32 = arith.constant 3 : i32
      %c8_i32_33 = arith.constant 8 : i32
      %46 = arith.muli %c3_i32, %c8_i32_33 : i32
      %47 = tpu.assume_multiple %46, 8 : i32
      %48 = arith.index_cast %47 : i32 to index
      %c0_34 = arith.constant 0 : index
      %49 = vector.load %arg9[%48, %c0_34] : memref<64x128xf32, #tpu.memory_space<vmem>>, vector<8x128xf32>
      %cst_35 = arith.constant dense<0.000000e+00> : vector<8x128xf32>
      %50 = tpu.matmul %43, %17, %cst_35 {dimension_numbers = #tpu.dot_dimension_numbers<[1], [0], [0], [1], [0, 0, 1, 1], [], []>} : vector<8x128xf32>, vector<128x128xf32>, vector<8x128xf32> -> vector<8x128xf32>
      %51 = arith.addf %49, %50 : vector<8x128xf32>
      %52 = math.tanh %51 : vector<8x128xf32>
      %53 = arith.index_cast %47 : i32 to index
      %c0_36 = arith.constant 0 : index
      %54 = vector.load %arg9[%53, %c0_36] : memref<64x128xf32, #tpu.memory_space<vmem>>, vector<8x128xf32>
      tpu.vector_store %arg9[%53, %c0_36], %52 {strides = array<i32>} : memref<64x128xf32, #tpu.memory_space<vmem>>, vector<8x128xf32>,
      %c4_i32 = arith.constant 4 : i32
      %c8_i32_37 = arith.constant 8 : i32
      %55 = arith.muli %c4_i32, %c8_i32_37 : i32
      %56 = tpu.assume_multiple %55, 8 : i32
      %57 = arith.index_cast %56 : i32 to index
      %c0_38 = arith.constant 0 : index
      %58 = vector.load %arg9[%57, %c0_38] : memref<64x128xf32, #tpu.memory_space<vmem>>, vector<8x128xf32>
      %cst_39 = arith.constant dense<0.000000e+00> : vector<8x128xf32>
      %59 = tpu.matmul %52, %17, %cst_39 {dimension_numbers = #tpu.dot_dimension_numbers<[1], [0], [0], [1], [0, 0, 1, 1], [], []>} : vector<8x128xf32>, vector<128x128xf32>, vector<8x128xf32> -> vector<8x128xf32>
      %60 = arith.addf %58, %59 : vector<8x128xf32>
      %61 = math.tanh %60 : vector<8x128xf32>
      %62 = arith.index_cast %56 : i32 to index
      %c0_40 = arith.constant 0 : index
      %63 = vector.load %arg9[%62, %c0_40] : memref<64x128xf32, #tpu.memory_space<vmem>>, vector<8x128xf32>
      tpu.vector_store %arg9[%62, %c0_40], %61 {strides = array<i32>} : memref<64x128xf32, #tpu.memory_space<vmem>>, vector<8x128xf32>,
      %c5_i32 = arith.constant 5 : i32
      %c8_i32_41 = arith.constant 8 : i32
      %64 = arith.muli %c5_i32, %c8_i32_41 : i32
      %65 = tpu.assume_multiple %64, 8 : i32
      %66 = arith.index_cast %65 : i32 to index
      %c0_42 = arith.constant 0 : index
      %67 = vector.load %arg9[%66, %c0_42] : memref<64x128xf32, #tpu.memory_space<vmem>>, vector<8x128xf32>
      %cst_43 = arith.constant dense<0.000000e+00> : vector<8x128xf32>
      %68 = tpu.matmul %61, %17, %cst_43 {dimension_numbers = #tpu.dot_dimension_numbers<[1], [0], [0], [1], [0, 0, 1, 1], [], []>} : vector<8x128xf32>, vector<128x128xf32>, vector<8x128xf32> -> vector<8x128xf32>
      %69 = arith.addf %67, %68 : vector<8x128xf32>
      %70 = math.tanh %69 : vector<8x128xf32>
      %71 = arith.index_cast %65 : i32 to index
      %c0_44 = arith.constant 0 : index
      %72 = vector.load %arg9[%71, %c0_44] : memref<64x128xf32, #tpu.memory_space<vmem>>, vector<8x128xf32>
      tpu.vector_store %arg9[%71, %c0_44], %70 {strides = array<i32>} : memref<64x128xf32, #tpu.memory_space<vmem>>, vector<8x128xf32>,
      %c6_i32 = arith.constant 6 : i32
      %c8_i32_45 = arith.constant 8 : i32
      %73 = arith.muli %c6_i32, %c8_i32_45 : i32
      %74 = tpu.assume_multiple %73, 8 : i32
      %75 = arith.index_cast %74 : i32 to index
      %c0_46 = arith.constant 0 : index
      %76 = vector.load %arg9[%75, %c0_46] : memref<64x128xf32, #tpu.memory_space<vmem>>, vector<8x128xf32>
      %cst_47 = arith.constant dense<0.000000e+00> : vector<8x128xf32>
      %77 = tpu.matmul %70, %17, %cst_47 {dimension_numbers = #tpu.dot_dimension_numbers<[1], [0], [0], [1], [0, 0, 1, 1], [], []>} : vector<8x128xf32>, vector<128x128xf32>, vector<8x128xf32> -> vector<8x128xf32>
      %78 = arith.addf %76, %77 : vector<8x128xf32>
      %79 = math.tanh %78 : vector<8x128xf32>
      %80 = arith.index_cast %74 : i32 to index
      %c0_48 = arith.constant 0 : index
      %81 = vector.load %arg9[%80, %c0_48] : memref<64x128xf32, #tpu.memory_space<vmem>>, vector<8x128xf32>
      tpu.vector_store %arg9[%80, %c0_48], %79 {strides = array<i32>} : memref<64x128xf32, #tpu.memory_space<vmem>>, vector<8x128xf32>,
      %c7_i32 = arith.constant 7 : i32
      %c8_i32_49 = arith.constant 8 : i32
      %82 = arith.muli %c7_i32, %c8_i32_49 : i32
      %83 = tpu.assume_multiple %82, 8 : i32
      %84 = arith.index_cast %83 : i32 to index
      %c0_50 = arith.constant 0 : index
      %85 = vector.load %arg9[%84, %c0_50] : memref<64x128xf32, #tpu.memory_space<vmem>>, vector<8x128xf32>
      %cst_51 = arith.constant dense<0.000000e+00> : vector<8x128xf32>
      %86 = tpu.matmul %79, %17, %cst_51 {dimension_numbers = #tpu.dot_dimension_numbers<[1], [0], [0], [1], [0, 0, 1, 1], [], []>} : vector<8x128xf32>, vector<128x128xf32>, vector<8x128xf32> -> vector<8x128xf32>
      %87 = arith.addf %85, %86 : vector<8x128xf32>
      %88 = math.tanh %87 : vector<8x128xf32>
      %89 = arith.index_cast %83 : i32 to index
      %c0_52 = arith.constant 0 : index
      %90 = vector.load %arg9[%89, %c0_52] : memref<64x128xf32, #tpu.memory_space<vmem>>, vector<8x128xf32>
      tpu.vector_store %arg9[%89, %c0_52], %88 {strides = array<i32>} : memref<64x128xf32, #tpu.memory_space<vmem>>, vector<8x128xf32>,
      %c8_i32_53 = arith.constant 8 : i32
    } else {
    }
    %c0 = arith.constant 0 : index
    %c0_1 = arith.constant 0 : index
    %3 = vector.load %arg9[%c0, %c0_1] : memref<64x128xf32, #tpu.memory_space<vmem>>, vector<64x128xf32>
    %c0_2 = arith.constant 0 : index
    %c0_3 = arith.constant 0 : index
    %4 = vector.load %arg6[%c0_2, %c0_3] : memref<128x128xf32, #tpu.memory_space<vmem>>, vector<128x128xf32>
    %cst = arith.constant dense<0.000000e+00> : vector<64x128xf32>
    %5 = tpu.matmul %3, %4, %cst {dimension_numbers = #tpu.dot_dimension_numbers<[1], [0], [0], [1], [0, 0, 1, 1], [], []>} : vector<64x128xf32>, vector<128x128xf32>, vector<64x128xf32> -> vector<64x128xf32>
    %c0_4 = arith.constant 0 : index
    %c0_5 = arith.constant 0 : index
    %6 = vector.load %arg7[%c0_4, %c0_5] : memref<1x128xf32, #tpu.memory_space<vmem>>, vector<1x128xf32>
    %7 = vector.broadcast %6 : vector<1x128xf32> to vector<64x128xf32>
    %8 = arith.addf %5, %7 : vector<64x128xf32>
    %c0_6 = arith.constant 0 : index
    %c0_7 = arith.constant 0 : index
    %9 = vector.load %arg8[%c0_6, %c0_7] : memref<64x128xf32, #tpu.memory_space<vmem>>, vector<64x128xf32>
    tpu.vector_store %arg8[%c0_6, %c0_7], %8 {strides = array<i32>} : memref<64x128xf32, #tpu.memory_space<vmem>>, vector<64x128xf32>,
    return
  }
  func.func @transform_0(%arg0: i32) -> (i32, i32) {
    %c0_i32 = arith.constant 0 : i32
    %c0_i32_0 = arith.constant 0 : i32
    %c0_i32_1 = arith.constant 0 : i32
    return %c0_i32, %c0_i32_0 : i32, i32
  }
  func.func @transform_1(%arg0: i32) -> (i32, i32) {
    %c0_i32 = arith.constant 0 : i32
    %c0_i32_0 = arith.constant 0 : i32
    %c0_i32_1 = arith.constant 0 : i32
    return %c0_i32, %c0_i32_0 : i32, i32
  }
  func.func @transform_2(%arg0: i32) -> (i32, i32) {
    %c0_i32 = arith.constant 0 : i32
    %c0_i32_0 = arith.constant 0 : i32
    %c0_i32_1 = arith.constant 0 : i32
    return %c0_i32, %c0_i32_0 : i32, i32
  }
  func.func @transform_3(%arg0: i32) -> (i32, i32) {
    %c0_i32 = arith.constant 0 : i32
    %c0_i32_0 = arith.constant 0 : i32
    %c0_i32_1 = arith.constant 0 : i32
    return %c0_i32, %c0_i32_0 : i32, i32
  }
  func.func @transform_4(%arg0: i32) -> (i32, i32) {
    %c0_i32 = arith.constant 0 : i32
    %c0_i32_0 = arith.constant 0 : i32
    %c0_i32_1 = arith.constant 0 : i32
    return %c0_i32, %c0_i32_0 : i32, i32
  }
  func.func @transform_5(%arg0: i32) -> (i32, i32) {
    %c0_i32 = arith.constant 0 : i32
    %c0_i32_0 = arith.constant 0 : i32
    return %c0_i32, %arg0 : i32, i32
  }
  func.func @transform_6(%arg0: i32) -> (i32, i32) {
    %c0_i32 = arith.constant 0 : i32
    %c0_i32_0 = arith.constant 0 : i32
    return %c0_i32, %arg0 : i32, i32
  }
  func.func @transform_7(%arg0: i32) -> (i32, i32) {
    %c0_i32 = arith.constant 0 : i32
    %c0_i32_0 = arith.constant 0 : i32
    return %c0_i32, %arg0 : i32, i32
  }
}

</mosaic_0001>

<bundles_post_ra>
// kernel: _rnn_forward_pallas.1
= control target key start
LH: loop header
LB: loop body
LE: loop exit
PB: predicated region body
PF: predicated region fallthrough
CT: control target
= control target key end

     0   :  { %12 = vsyncpa [#allocation4], 0  ;;  %s937_s0 = inlined_call_operand.hbm [shape: f32[64,128], index: 0, kind: input, shape index: {}]   ;;  %s938_s1 = inlined_call_operand.hbm [shape: f32[8,128], index: 1, kind: input, shape index: {}]   ;;  %s939_s2 = inlined_call_operand.hbm [shape: f32[128,128], index: 2, kind: input, shape index: {}]   ;;  %s940_s3 = inlined_call_operand.hbm [shape: f32[128,128], index: 3, kind: input, shape index: {}]   ;;  %s941_s4 = inlined_call_operand.vmem [shape: f32[1,128], index: 4, kind: input, shape index: {}]   ;;  %s942_s5 = inlined_call_operand.hbm [shape: f32[128,128], index: 5, kind: input, shape index: {}]   ;;  %s943_s6 = inlined_call_operand.vmem [shape: f32[1,128], index: 6, kind: input, shape index: {}]   ;;  %s944_s7 = inlined_call_operand.hbm [shape: f32[64,128], index: 7, kind: output, shape index: {}]  }
   0x1   :  { %13 = vsyncpa [#allocation7], 0 }
   0x2   :  { %14 = vsyncpa [#allocation10], 0  ;;  %s34_s26 = sshll.u32 %s938_s1, 4  ;;  %s35_s26 = int_to_ptr.hbm [resolvable:$true] %s34_s26 }
   0x3   :  { %15 = vsyncpa [#allocation5], 0  ;;  %s676_s27 = smov [#allocation6]   ;;  %s57_s8 = sshll.u32 %s940_s3, 4  ;;  %s58_s8 = int_to_ptr.hbm [resolvable:$true] %s57_s8 }
   0x4   :  { %s36_s28 = sshll.u32 %s676_s27, 4  ;;  %s677_s9 = smov [#allocation9]   ;;  %s37_s28 = int_to_ptr.vmem [resolvable:$true] %s36_s28 }
   0x5   :  { %39 = dma.hbm_to_vmem [thread:$0]  %s35_s26, 128, %s37_s28, [#allocation7]  }
   0x6   :  { %s59_s10 = sshll.u32 %s677_s9, 4  ;;  %s20_s13 = sshll.u32 %s937_s0, 4  ;;  %s60_s10 = int_to_ptr.vmem [resolvable:$true] %s59_s10  ;;  %s21_s13 = int_to_ptr.hbm [resolvable:$true] %s20_s13 }
   0x7   :  { %s678_s1 = smov 128   ;;  %s679_s14 = smov 8  }
   0x8   :  { %65 = dma.hbm_to_vmem [thread:$0]  %s58_s8, 2048, %s60_s10, [#allocation10], %s678_s1, %s678_s1, %s679_s14  }
   0x9   :  { %s44_s17 = sshll.u32 %s939_s2, 4  ;;  %s680_s3 = smov [#allocation3]   ;;  %s45_s17 = int_to_ptr.hbm [resolvable:$true] %s44_s17 }
   0xa   :  { %s22_s18 = sshll.u32 %s680_s3, 4  ;;  %s681_s0 = smov [#allocation8]   ;;  %s23_s18 = int_to_ptr.vmem [resolvable:$true] %s22_s18 }
   0xb   :  { %28 = dma.hbm_to_vmem [thread:$0]  %s21_s13, 1024, %s23_s18, [#allocation4], %s678_s1, %s678_s1, %s679_s14  }
   0xc   :  { %s46_s19 = sshll.u32 %s681_s0, 4  ;;  %s72_s22 = sshll.u32 %s942_s5, 4  ;;  %s47_s19 = int_to_ptr.vmem [resolvable:$true] %s46_s19  ;;  %s73_s22 = int_to_ptr.hbm [resolvable:$true] %s72_s22 }
   0xd   :  { %52 = dma.hbm_to_vmem [thread:$0]  %s45_s17, 2048, %s47_s19, [#allocation7], %s678_s1, %s678_s1, %s679_s14  }
   0xe   :  { %s682_s2 = smov [#allocation11]  }
   0xf   :  { %s74_s23 = sshll.u32 %s682_s2, 4  ;;  %s75_s23 = int_to_ptr.vmem [resolvable:$true] %s74_s23 }
  0x10   :  { %80 = dma.hbm_to_vmem [thread:$0]  %s73_s22, 2048, %s75_s23, [#allocation10], %s678_s1, %s678_s1, %s679_s14  }
  0x11   :  { %668 = dma.done.wait [#allocation4], 1024  }
  0x12   :  { %669 = vsyncadd [#allocation4], 4294966272 }
  0x13   :  { %670 = dma.done.wait [#allocation7], 2176  }
  0x14   :  { %671 = vsyncadd [#allocation7], 4294965120 }
  0x15   :  { %672 = dma.done.wait [#allocation10], 4096  }
  0x16   :  { %673 = vsyncadd [#allocation10], 4294963200  ;;  %v130_v0 = vld [vmem:[#allocation8 + $0x78] sm:$0xff]  ;;  %v129_v1 = vld [vmem:[#allocation8 + $0x70] sm:$0xff]  ;;  %s483_s29 = sshll.u32 %s944_s7, 4  ;;  %s484_s29 = int_to_ptr.hbm [resolvable:$true] %s483_s29 }
  0x17   :  { %v751_v2 = vld [vmem:[#allocation9 + $0x78] sm:$0xff]  ;;  %135 = vmatpush.msra.mxu0 %v130_v0  ;;  %v754_v3 = vld [vmem:[#allocation9 + $0x70] sm:$0xff]  ;;  %v128_v4 = vld [vmem:[#allocation8 + $0x68] sm:$0xff] }
  0x18   :  { %202 = vmatpush.msra.mxu1 %v751_v2  ;;  %v756_v5 = vld [vmem:[#allocation9 + $0x68] sm:$0xff]  ;;  %227 = vmatpush.msra.mxu3 %v751_v2  ;;  %v127_v6 = vld [vmem:[#allocation8 + $0x60] sm:$0xff]  ;;  %v126_v8 = vld [vmem:[#allocation8 + $0x58] sm:$0xff] }
  0x19   :  { %302 = vmatpush.msra.mxu2 %v751_v2  ;;  %136 = vmatpush.msra.mxu0 %v129_v1  ;;  %v761_v7 = vld [vmem:[#allocation9 + $0x60] sm:$0xff]  ;;  %v766_v9 = vld [vmem:[#allocation9 + $0x58] sm:$0xff]  ;;  %v125_v10 = vld [vmem:[#allocation8 + $0x50] sm:$0xff] }
  0x1a   :  { %203 = vmatpush.msra.mxu1 %v754_v3  ;;  %228 = vmatpush.msra.mxu3 %v754_v3  ;;  %v771_v11 = vld [vmem:[#allocation9 + $0x50] sm:$0xff]  ;;  %v124_v12 = vld [vmem:[#allocation8 + $0x48] sm:$0xff]  ;;  %v123_v14 = vld [vmem:[#allocation8 + $0x40] sm:$0xff] }
  0x1b   :  { %303 = vmatpush.msra.mxu2 %v754_v3  ;;  %137 = vmatpush.msra.mxu0 %v128_v4  ;;  %v776_v13 = vld [vmem:[#allocation9 + $0x48] sm:$0xff]  ;;  %v781_v15 = vld [vmem:[#allocation9 + $0x40] sm:$0xff]  ;;  %v122_v16 = vld [vmem:[#allocation8 + $0x38] sm:$0xff] }
  0x1c   :  { %204 = vmatpush.msra.mxu1 %v756_v5  ;;  %229 = vmatpush.msra.mxu3 %v756_v5  ;;  %v786_v17 = vld [vmem:[#allocation9 + $0x38] sm:$0xff]  ;;  %v121_v18 = vld [vmem:[#allocation8 + $0x30] sm:$0xff]  ;;  %v120_v20 = vld [vmem:[#allocation8 + $0x28] sm:$0xff] }
  0x1d   :  { %304 = vmatpush.msra.mxu2 %v756_v5  ;;  %138 = vmatpush.msra.mxu0 %v127_v6  ;;  %v791_v19 = vld [vmem:[#allocation9 + $0x30] sm:$0xff]  ;;  %v796_v21 = vld [vmem:[#allocation9 + $0x28] sm:$0xff]  ;;  %v119_v22 = vld [vmem:[#allocation8 + $0x20] sm:$0xff] }
  0x1e   :  { %205 = vmatpush.msra.mxu1 %v761_v7  ;;  %230 = vmatpush.msra.mxu3 %v761_v7  ;;  %v801_v23 = vld [vmem:[#allocation9 + $0x20] sm:$0xff]  ;;  %v118_v24 = vld [vmem:[#allocation8 + $0x18] sm:$0xff]  ;;  %v117_v26 = vld [vmem:[#allocation8 + $0x10] sm:$0xff] }
  0x1f   :  { %305 = vmatpush.msra.mxu2 %v761_v7  ;;  %139 = vmatpush.msra.mxu0 %v126_v8  ;;  %v806_v25 = vld [vmem:[#allocation9 + $0x18] sm:$0xff]  ;;  %v811_v27 = vld [vmem:[#allocation9 + $0x10] sm:$0xff]  ;;  %v116_v28 = vld [vmem:[#allocation8 + $0x8] sm:$0xff] }
  0x20   :  { %206 = vmatpush.msra.mxu1 %v766_v9  ;;  %231 = vmatpush.msra.mxu3 %v766_v9  ;;  %v816_v29 = vld [vmem:[#allocation9 + $0x8] sm:$0xff]  ;;  %v115_v30 = vld [vmem:[#allocation8] sm:$0xff]  ;;  %v107_v32 = vld [vmem:[#allocation3] sm:$0xff] }
  0x21   :  { %306 = vmatpush.msra.mxu2 %v766_v9  ;;  %140 = vmatpush.msra.mxu0 %v125_v10  ;;  %v821_v31 = vld [vmem:[#allocation9] sm:$0xff]  ;;  %v200_v33 = vld [vmem:[#allocation6] sm:$0xff]  ;;  %v109_v41 = vld [vmem:[#allocation3 + $0x10] sm:$0xff] }
  0x22   :  { %207 = vmatpush.msra.mxu1 %v771_v11  ;;  %232 = vmatpush.msra.mxu3 %v771_v11  ;;  %v108_v34 = vld [vmem:[#allocation3 + $0x8] sm:$0xff]  ;;  %v898_v35 = vld [vmem:[%s941_s4] ss:$0 sm:$0xff]  ;;  %v110_v47 = vld [vmem:[#allocation3 + $0x18] sm:$0xff] }
  0x23   :  { %307 = vmatpush.msra.mxu2 %v771_v11  ;;  %141 = vmatpush.msra.mxu0 %v124_v12  ;;  %v423_v48 = vld [vmem:[#allocation11 + $0x78] sm:$0xff]  ;;  %v422_v49 = vld [vmem:[#allocation11 + $0x70] sm:$0xff]  ;;  %v421_v50 = vld [vmem:[#allocation11 + $0x68] sm:$0xff] }
  0x24   :  { %208 = vmatpush.msra.mxu1 %v776_v13  ;;  %233 = vmatpush.msra.mxu3 %v776_v13  ;;  %v420_v51 = vld [vmem:[#allocation11 + $0x60] sm:$0xff]  ;;  %v419_v52 = vld [vmem:[#allocation11 + $0x58] sm:$0xff]  ;;  %v418_v53 = vld [vmem:[#allocation11 + $0x50] sm:$0xff] }
  0x25   :  { %308 = vmatpush.msra.mxu2 %v776_v13  ;;  %142 = vmatpush.msra.mxu0 %v123_v14  ;;  %v417_v59 = vld [vmem:[#allocation11 + $0x48] sm:$0xff]  ;;  %v416_v60 = vld [vmem:[#allocation11 + $0x40] sm:$0xff]  ;;  %v415_v61 = vld [vmem:[#allocation11 + $0x38] sm:$0xff] }
  0x26   :  { %209 = vmatpush.msra.mxu1 %v781_v15  ;;  %234 = vmatpush.msra.mxu3 %v781_v15  ;;  %v414_v62 = vld [vmem:[#allocation11 + $0x30] sm:$0xff]  ;;  %v413_v63 = vld [vmem:[#allocation11 + $0x28] sm:$0xff]  ;;  %v412_v0 = vld [vmem:[#allocation11 + $0x20] sm:$0xff] }
  0x27   :  { %309 = vmatpush.msra.mxu2 %v781_v15  ;;  %143 = vmatpush.msra.mxu0 %v122_v16  ;;  %v411_v1 = vld [vmem:[#allocation11 + $0x18] sm:$0xff]  ;;  %v409_v4 = vld [vmem:[#allocation11 + $0x8] sm:$0xff] }
  0x28   :  { %210 = vmatpush.msra.mxu1 %v786_v17  ;;  %235 = vmatpush.msra.mxu3 %v786_v17  ;;  %v113_v16 = vld [vmem:[#allocation3 + $0x30] sm:$0xff] }
  0x29   :  { %310 = vmatpush.msra.mxu2 %v786_v17  ;;  %144 = vmatpush.msra.mxu0 %v121_v18 }
  0x2a   :  { %211 = vmatpush.msra.mxu1 %v791_v19  ;;  %236 = vmatpush.msra.mxu3 %v791_v19 }
  0x2b   :  { %311 = vmatpush.msra.mxu2 %v791_v19  ;;  %145 = vmatpush.msra.mxu0 %v120_v20 }
  0x2c   :  { %212 = vmatpush.msra.mxu1 %v796_v21  ;;  %237 = vmatpush.msra.mxu3 %v796_v21 }
  0x2d   :  { %312 = vmatpush.msra.mxu2 %v796_v21  ;;  %146 = vmatpush.msra.mxu0 %v119_v22 }
  0x2e   :  { %213 = vmatpush.msra.mxu1 %v801_v23  ;;  %238 = vmatpush.msra.mxu3 %v801_v23 }
  0x2f   :  { %313 = vmatpush.msra.mxu2 %v801_v23  ;;  %147 = vmatpush.msra.mxu0 %v118_v24 }
  0x30   :  { %214 = vmatpush.msra.mxu1 %v806_v25  ;;  %239 = vmatpush.msra.mxu3 %v806_v25 }
  0x31   :  { %314 = vmatpush.msra.mxu2 %v806_v25  ;;  %148 = vmatpush.msra.mxu0 %v117_v26 }
  0x32   :  { %215 = vmatpush.msra.mxu1 %v811_v27  ;;  %240 = vmatpush.msra.mxu3 %v811_v27 }
  0x33   :  { %315 = vmatpush.msra.mxu2 %v811_v27  ;;  %149 = vmatpush.msra.mxu0 %v116_v28 }
  0x34   :  { %216 = vmatpush.msra.mxu1 %v816_v29  ;;  %241 = vmatpush.msra.mxu3 %v816_v29 }
  0x35   :  { %316 = vmatpush.msra.mxu2 %v816_v29  ;;  %150 = vmatpush.msra.mxu0 %v115_v30 }
  0x36   :  { %217 = vmatpush.msra.mxu1 %v821_v31  ;;  %151 = vmatmul.f32.vlgmr.msra.gmra.mxu0 %v107_v32 }
  0x37   :  { %218 = vmatmul.f32.vlgmr.msra.gmra.mxu1 %v200_v33  ;;  %242 = vmatpush.msra.mxu3 %v821_v31 }
  0x38   :  { %277 = vmatpush.msrb.mxu1 %v751_v2  ;;  %317 = vmatpush.msra.mxu2 %v821_v31 }
  0x39   :  { %252 = vmatpush.msrb.mxu3 %v751_v2  ;;  %352 = vmatpush.msrb.mxu0 %v751_v2 }
  0x3a   :  { %278 = vmatpush.msrb.mxu1 %v754_v3  ;;  %428 = vmatpush.msrb.mxu2 %v423_v48 }
  0x3b   :  { %253 = vmatpush.msrb.mxu3 %v754_v3  ;;  %353 = vmatpush.msrb.mxu0 %v754_v3 }
  0x3c   :  { %279 = vmatpush.msrb.mxu1 %v756_v5  ;;  %429 = vmatpush.msrb.mxu2 %v422_v49 }
  0x3d   :  { %254 = vmatpush.msrb.mxu3 %v756_v5  ;;  %354 = vmatpush.msrb.mxu0 %v756_v5 }
  0x3e   :  { %280 = vmatpush.msrb.mxu1 %v761_v7  ;;  %154 = vmatmul.f32.gmra.mxu0 %v108_v34 }
  0x3f   :  { %255 = vmatpush.msrb.mxu3 %v761_v7  ;;  %355 = vmatpush.msrb.mxu0 %v761_v7 }
  0x40   :  { %281 = vmatpush.msrb.mxu1 %v766_v9  ;;  %430 = vmatpush.msrb.mxu2 %v421_v50 }
  0x41   :  { %256 = vmatpush.msrb.mxu3 %v766_v9  ;;  %356 = vmatpush.msrb.mxu0 %v766_v9 }
  0x42   :  { %282 = vmatpush.msrb.mxu1 %v771_v11  ;;  %431 = vmatpush.msrb.mxu2 %v420_v51 }
  0x43   :  { %257 = vmatpush.msrb.mxu3 %v771_v11  ;;  %357 = vmatpush.msrb.mxu0 %v771_v11 }
  0x44   :  { %283 = vmatpush.msrb.mxu1 %v776_v13  ;;  %432 = vmatpush.msrb.mxu2 %v419_v52 }
  0x45   :  { %258 = vmatpush.msrb.mxu3 %v776_v13  ;;  %358 = vmatpush.msrb.mxu0 %v776_v13 }
  0x46   :  { %284 = vmatpush.msrb.mxu1 %v781_v15  ;;  %157 = vmatmul.f32.gmra.mxu0 %v109_v41 }
  0x47   :  { %259 = vmatpush.msrb.mxu3 %v781_v15  ;;  %359 = vmatpush.msrb.mxu0 %v781_v15 }
  0x48   :  { %285 = vmatpush.msrb.mxu1 %v786_v17  ;;  %433 = vmatpush.msrb.mxu2 %v418_v53 }
  0x49   :  { %260 = vmatpush.msrb.mxu3 %v786_v17  ;;  %360 = vmatpush.msrb.mxu0 %v786_v17 }
  0x4a   :  { %286 = vmatpush.msrb.mxu1 %v791_v19  ;;  %434 = vmatpush.msrb.mxu2 %v417_v59 }
  0x4b   :  { %261 = vmatpush.msrb.mxu3 %v791_v19  ;;  %361 = vmatpush.msrb.mxu0 %v791_v19 }
  0x4c   :  { %287 = vmatpush.msrb.mxu1 %v796_v21  ;;  %435 = vmatpush.msrb.mxu2 %v416_v60 }
  0x4d   :  { %262 = vmatpush.msrb.mxu3 %v796_v21  ;;  %362 = vmatpush.msrb.mxu0 %v796_v21 }
  0x4e   :  { %288 = vmatpush.msrb.mxu1 %v801_v23  ;;  %160 = vmatmul.f32.gmra.mxu0 %v110_v47 }
  0x4f   :  { %263 = vmatpush.msrb.mxu3 %v801_v23  ;;  %363 = vmatpush.msrb.mxu0 %v801_v23 }
  0x50   :  { %289 = vmatpush.msrb.mxu1 %v806_v25  ;;  %436 = vmatpush.msrb.mxu2 %v415_v61 }
  0x51   :  { %264 = vmatpush.msrb.mxu3 %v806_v25  ;;  %364 = vmatpush.msrb.mxu0 %v806_v25 }
  0x52   :  { %290 = vmatpush.msrb.mxu1 %v811_v27  ;;  %437 = vmatpush.msrb.mxu2 %v414_v62 }
  0x53   :  { %265 = vmatpush.msrb.mxu3 %v811_v27  ;;  %365 = vmatpush.msrb.mxu0 %v811_v27 }
  0x54   :  { %291 = vmatpush.msrb.mxu1 %v816_v29  ;;  %438 = vmatpush.msrb.mxu2 %v413_v63 }
  0x55   :  { %266 = vmatpush.msrb.mxu3 %v816_v29  ;;  %366 = vmatpush.msrb.mxu0 %v816_v29 }
  0x56   :  { %292 = vmatpush.msrb.mxu1 %v821_v31  ;;  %439 = vmatpush.msrb.mxu2 %v412_v0 }
  0x57   :  { %267 = vmatpush.msrb.mxu3 %v821_v31  ;;  %367 = vmatpush.msrb.mxu0 %v821_v31 }
  0x58   :  { %377 = vmatpush.msra.mxu1 %v751_v2  ;;  %440 = vmatpush.msrb.mxu2 %v411_v1 }
  0x5a   :  { %378 = vmatpush.msra.mxu1 %v754_v3 }
  0x5c   :  { %379 = vmatpush.msra.mxu1 %v756_v5 }
  0x5e   :  { %380 = vmatpush.msra.mxu1 %v761_v7 }
  0x60   :  { %381 = vmatpush.msra.mxu1 %v766_v9 }
  0x62   :  { %382 = vmatpush.msra.mxu1 %v771_v11 }
  0x64   :  { %383 = vmatpush.msra.mxu1 %v776_v13 }
  0x66   :  { %384 = vmatpush.msra.mxu1 %v781_v15 }
  0x68   :  { %385 = vmatpush.msra.mxu1 %v786_v17 }
  0x6a   :  { %386 = vmatpush.msra.mxu1 %v791_v19 }
  0x6c   :  { %387 = vmatpush.msra.mxu1 %v796_v21 }
  0x6e   :  { %388 = vmatpush.msra.mxu1 %v801_v23 }
  0x70   :  { %389 = vmatpush.msra.mxu1 %v806_v25 }
  0x72   :  { %390 = vmatpush.msra.mxu1 %v811_v27 }
  0x74   :  { %391 = vmatpush.msra.mxu1 %v816_v29 }
  0x76   :  { %392 = vmatpush.msra.mxu1 %v821_v31 }
  0xb3   :  { %v152_v36 = vpop.f32.mrf.mxu0 }
  0xb4   :  { %v219_v37 = vpop.f32.mrf.mxu1  ;;  %v153_v38 = vadd.f32 %v898_v35, %v152_v36 }
  0xb6   :  { %v222_v39 = vadd.f32 %v219_v37, %v153_v38 }
  0xb8   :  { %508 = vtanh.f32 %v222_v39 }
  0xbb   :  { %v155_v42 = vpop.f32.mrf.mxu0 }
  0xbc   :  { %v156_v43 = vadd.f32 %v898_v35, %v155_v42 }
  0xbe   :  { %v901_v40 = vpop.eup %508 }
  0xbf   :  { %243 = vmatmul.f32.vlgmr.msra.gmra.mxu3 %v901_v40 }
  0xc0   :  { %327 = vmatpush.msra.mxu3 %v751_v2  ;;  %v410_v2 = vld [vmem:[#allocation11 + $0x10] sm:$0xff] }
  0xc1   :  { %441 = vmatpush.msrb.mxu2 %v410_v2 }
  0xc2   :  { %328 = vmatpush.msra.mxu3 %v754_v3  ;;  %v111_v3 = vld [vmem:[#allocation3 + $0x20] sm:$0xff] }
  0xc3   :  { %v158_v54 = vpop.f32.mrf.mxu0  ;;  %163 = vmatmul.f32.gmra.mxu0 %v111_v3  ;;  %442 = vmatpush.msrb.mxu2 %v409_v4 }
  0xc4   :  { %329 = vmatpush.msra.mxu3 %v756_v5  ;;  %v159_v55 = vadd.f32 %v898_v35, %v158_v54  ;;  %v408_v5 = vld [vmem:[#allocation11] sm:$0xff] }
  0xc5   :  { %443 = vmatpush.msrb.mxu2 %v408_v5 }
  0xc6   :  { %330 = vmatpush.msra.mxu3 %v761_v7 }
  0xc8   :  { %331 = vmatpush.msra.mxu3 %v766_v9 }
  0xca   :  { %332 = vmatpush.msra.mxu3 %v771_v11  ;;  %v112_v11 = vld [vmem:[#allocation3 + $0x28] sm:$0xff] }
  0xcb   :  { %v161_v6 = vpop.f32.mrf.mxu0  ;;  %166 = vmatmul.f32.gmra.mxu0 %v112_v11 }
  0xcc   :  { %333 = vmatpush.msra.mxu3 %v776_v13  ;;  %v162_v7 = vadd.f32 %v898_v35, %v161_v6 }
  0xce   :  { %334 = vmatpush.msra.mxu3 %v781_v15 }
  0xd0   :  { %335 = vmatpush.msra.mxu3 %v786_v17  ;;  %v507_v17 = vld [vmem:[%s943_s6] ss:$0 sm:$0xff]  ;;  %s683_s6 = smov [#allocation12]  }
  0xd1   :  { %s481_s26 = sshll.u32 %s683_s6, 4  ;;  %s482_s26 = int_to_ptr.vmem [resolvable:$true] %s481_s26 }
  0xd2   :  { %336 = vmatpush.msra.mxu3 %v791_v19 }
  0xd3   :  { %169 = vmatmul.f32.gmra.mxu0 %v113_v16 }
  0xd4   :  { %337 = vmatpush.msra.mxu3 %v796_v21 }
  0xd6   :  { %338 = vmatpush.msra.mxu3 %v801_v23 }
  0xd8   :  { %339 = vmatpush.msra.mxu3 %v806_v25 }
  0xda   :  { %340 = vmatpush.msra.mxu3 %v811_v27  ;;  %v114_v27 = vld [vmem:[#allocation3 + $0x38] sm:$0xff] }
  0xdb   :  { %172 = vmatmul.f32.gmra.mxu0 %v114_v27 }
  0xdc   :  { %341 = vmatpush.msra.mxu3 %v816_v29 }
  0xde   :  { %342 = vmatpush.msra.mxu3 %v821_v31 }
 0x140   :  { %v164_v12 = vpop.f32.mrf.mxu0 }
 0x141   :  { %v165_v13 = vadd.f32 %v898_v35, %v164_v12 }
 0x142   :  { %v244_v44 = vpop.f32.mrf.mxu3 }
 0x143   :  { %v247_v45 = vadd.f32 %v244_v44, %v156_v43 }
 0x145   :  { %510 = vtanh.f32 %v247_v45 }
 0x148   :  { %v167_v28 = vpop.f32.mrf.mxu0 }
 0x149   :  { %v168_v29 = vadd.f32 %v898_v35, %v167_v28 }
 0x14b   :  { %v511_v46 = vpop.eup %510 }
 0x14c   :  { %268 = vmatmul.f32.vlgmr.msrb.gmra.mxu3 %v511_v46 }
 0x150   :  { %v170_v36 = vpop.f32.mrf.mxu0 }
 0x151   :  { %v171_v38 = vadd.f32 %v898_v35, %v170_v36 }
 0x158   :  { %v173_v37 = vpop.f32.mrf.mxu0 }
 0x159   :  { %v174_v44 = vadd.f32 %v898_v35, %v173_v37 }
 0x1cf   :  { %v269_v56 = vpop.f32.mrf.mxu3 }
 0x1d0   :  { %v272_v57 = vadd.f32 %v269_v56, %v159_v55 }
 0x1d2   :  { %512 = vtanh.f32 %v272_v57 }
 0x1d8   :  { %v513_v58 = vpop.eup %512 }
 0x1d9   :  { %293 = vmatmul.f32.vlgmr.msrb.gmra.mxu1 %v513_v58 }
 0x256   :  { %v294_v8 = vpop.f32.mrf.mxu1 }
 0x257   :  { %v297_v9 = vadd.f32 %v294_v8, %v162_v7 }
 0x259   :  { %514 = vtanh.f32 %v297_v9 }
 0x25f   :  { %v515_v10 = vpop.eup %514 }
 0x260   :  { %318 = vmatmul.f32.vlgmr.msra.gmra.mxu2 %v515_v10 }
 0x268   :  { %444 = vmatmul.f32.vlgmr.msrb.gmra.mxu2 %v901_v40 }
 0x270   :  { %447 = vmatmul.f32.gmra.mxu2 %v511_v46 }
 0x278   :  { %450 = vmatmul.f32.gmra.mxu2 %v513_v58 }
 0x280   :  { %453 = vmatmul.f32.gmra.mxu2 %v515_v10 }
 0x2e3   :  { %v319_v14 = vpop.f32.mrf.mxu2 }
 0x2e4   :  { %v322_v15 = vadd.f32 %v319_v14, %v165_v13 }
 0x2e6   :  { %516 = vtanh.f32 %v322_v15 }
 0x2eb   :  { %v445_v18 = vpop.f32.mrf.mxu2 }
 0x2ec   :  { %v517_v19 = vpop.eup %516  ;;  %v446_v20 = vadd.f32 %v507_v17, %v445_v18 }
 0x2ed   :  { %343 = vmatmul.f32.vlgmr.msra.gmra.mxu3 %v517_v19  ;;  %456 = vmatmul.f32.gmra.mxu2 %v517_v19 }
 0x2ee   :  { %469 = vst [vmem:[#allocation12] sm:$0xff] %v446_v20 }
 0x2f3   :  { %v448_v21 = vpop.f32.mrf.mxu2 }
 0x2f4   :  { %v449_v22 = vadd.f32 %v507_v17, %v448_v21 }
 0x2f6   :  { %470 = vst [vmem:[#allocation12 + $0x8] sm:$0xff] %v449_v22 }
 0x2fb   :  { %v451_v23 = vpop.f32.mrf.mxu2 }
 0x2fc   :  { %v452_v24 = vadd.f32 %v507_v17, %v451_v23 }
 0x2fe   :  { %471 = vst [vmem:[#allocation12 + $0x10] sm:$0xff] %v452_v24 }
 0x303   :  { %v454_v25 = vpop.f32.mrf.mxu2 }
 0x304   :  { %v455_v26 = vadd.f32 %v507_v17, %v454_v25 }
 0x306   :  { %472 = vst [vmem:[#allocation12 + $0x18] sm:$0xff] %v455_v26 }
 0x370   :  { %v344_v30 = vpop.f32.mrf.mxu3  ;;  %v457_v31 = vpop.f32.mrf.mxu2 }
 0x371   :  { %v347_v32 = vadd.f32 %v344_v30, %v168_v29  ;;  %v458_v33 = vadd.f32 %v507_v17, %v457_v31 }
 0x373   :  { %518 = vtanh.f32 %v347_v32  ;;  %473 = vst [vmem:[#allocation12 + $0x20] sm:$0xff] %v458_v33 }
 0x379   :  { %v519_v34 = vpop.eup %518 }
 0x37a   :  { %368 = vmatmul.f32.vlgmr.msrb.gmra.mxu0 %v519_v34  ;;  %459 = vmatmul.f32.gmra.mxu2 %v519_v34 }
 0x3f7   :  { %v369_v39 = vpop.f32.mrf.mxu0 }
 0x3f8   :  { %v372_v40 = vadd.f32 %v369_v39, %v171_v38 }
 0x3fa   :  { %520 = vtanh.f32 %v372_v40 }
 0x3fd   :  { %v460_v41 = vpop.f32.mrf.mxu2 }
 0x3fe   :  { %v461_v42 = vadd.f32 %v507_v17, %v460_v41 }
 0x400   :  { %v521_v43 = vpop.eup %520  ;;  %474 = vst [vmem:[#allocation12 + $0x28] sm:$0xff] %v461_v42 }
 0x401   :  { %393 = vmatmul.f32.vlgmr.msra.gmra.mxu1 %v521_v43  ;;  %462 = vmatmul.f32.gmra.mxu2 %v521_v43 }
 0x47e   :  { %v394_v45 = vpop.f32.mrf.mxu1 }
 0x47f   :  { %v397_v46 = vadd.f32 %v394_v45, %v174_v44 }
 0x481   :  { %522 = vtanh.f32 %v397_v46 }
 0x484   :  { %v463_v47 = vpop.f32.mrf.mxu2 }
 0x485   :  { %v464_v48 = vadd.f32 %v507_v17, %v463_v47 }
 0x487   :  { %v523_v49 = vpop.eup %522  ;;  %475 = vst [vmem:[#allocation12 + $0x30] sm:$0xff] %v464_v48 }
 0x488   :  { %465 = vmatmul.f32.gmra.mxu2 %v523_v49 }
 0x50b   :  { %v466_v50 = vpop.f32.mrf.mxu2 }
 0x50c   :  { %v467_v51 = vadd.f32 %v507_v17, %v466_v50 }
 0x50e   :  { %476 = vst [vmem:[#allocation12 + $0x38] sm:$0xff] %v467_v51 }
 0x50f   :  { %489 = dma.vmem_to_hbm [thread:$0]  %s482_s26, 1024, %s484_s29, [#allocation5], %s678_s1, %s678_s1, %s679_s14  }
 0x510   :  { %674 = dma.done.wait [#allocation5], 1024  }
 0x511   :  { %675 = vsyncadd [#allocation5], 4294966272 }
 0x512   :  { %494 = vsyncpa [#allocation4], 1 }
 0x513   :  { %495 = vsyncpa [#allocation7], 1 }
 0x514   :  { %496 = vsyncpa [#allocation10], 1 }
 0x515   :  { %497 = vsyncpa [#allocation5], 1 }

</bundles_post_ra>
